<compile_context>
chip_gen: v6e
topology: v6e:2x2x1
jax: 0.10.0
libtpu: 0.0.40
codegen_flags: <defaults>
</compile_context>

<pallas_src>
import functools

import jax
import jax.numpy as jnp
from jax.experimental import pallas as pl
from jax.experimental.pallas import tpu as pltpu


def _la_mixed_fused_kernel(mixw_ref,     # scalar-prefetch: (K,) mixing weights, SMEM
                           x_ref,        # (TILE_N, H)   node-feature tile, VMEM (bf16/f32)
                           wcat_ref,     # (H, K*H)      fused pre-transposed weights
                           bcat_ref,     # (1, K*H)      fused biases (f32)
                           o_ref,        # (TILE_N, H)   output tile
                           *, num_ops, hidden):
    # Single lane-dense MXU matmul over all K primitives at once: [TILE_N, H] @ [H, K*H].
    y = jnp.dot(x_ref[...], wcat_ref[...], preferred_element_type=jnp.float32)
    y = y + bcat_ref[...]            # bias in f32
    y = jnp.maximum(y, 0.0)          # relu over the whole fused block (VPU)

    # Mixing-weight-scaled reduction over the K lane segments (statically unrolled, VPU).
    acc = mixw_ref[0] * y[:, 0:hidden]
    for k in range(1, num_ops):
        acc = acc + mixw_ref[k] * y[:, k * hidden:(k + 1) * hidden]

    o_ref[...] = acc.astype(o_ref.dtype)


def prepare_la_mixed_params(op_w, op_b, *, compute_dtype=jnp.bfloat16):
    """One-time parameter setup (analogue of storing pre-transposed weights in the module).

    op_w : [K, H, H]  per-op linear weights in PyTorch (out, in) convention.
    op_b : [K, H]     per-op biases.
    returns (wcat [H, K*H] in compute_dtype, bcat [1, K*H] f32)
    with  wcat[:, k*H:(k+1)*H] == op_w[k].T
    """
    K, H, _ = op_w.shape
    wcat = jnp.transpose(op_w, (2, 0, 1)).reshape(H, K * H).astype(compute_dtype)
    bcat = op_b.reshape(1, K * H).astype(jnp.float32)
    return wcat, bcat


def la_mixed_op(x, weights, wcat, bcat, *, tile_n=256, compute_dtype=jnp.bfloat16):
    """
    x       : [N, H]     node features
    weights : [K]        architecture mixing weights (softmax-ed alphas)
    wcat    : [H, K*H]   fused pre-transposed per-op weights (from prepare_la_mixed_params)
    bcat    : [1, K*H]   fused biases
    returns : [N, H]     sum_k weights[k] * relu(x @ W_k^T + b_k)
    """
    N, H = x.shape
    KH = wcat.shape[1]
    K = KH // H

    # Tile the node axis; keep the sublane axis a multiple of 8 (or the full extent).
    if N <= tile_n:
        tile_n = N
    elif tile_n % 8 != 0:
        tile_n = max(8, (tile_n // 8) * 8)
    grid = (pl.cdiv(N, tile_n),)

    x_c = x.astype(compute_dtype)
    mixw = weights.astype(jnp.float32)

    kernel = functools.partial(_la_mixed_fused_kernel, num_ops=K, hidden=H)

    grid_spec = pltpu.PrefetchScalarGridSpec(
        num_scalar_prefetch=1,                               # mixing weights land in SMEM
        grid=grid,
        in_specs=[
            pl.BlockSpec((tile_n, H), lambda i, mw: (i, 0)),  # x tile
            pl.BlockSpec((H, KH), lambda i, mw: (0, 0)),      # fused weights (resident)
            pl.BlockSpec((1, KH), lambda i, mw: (0, 0)),      # fused bias (resident)
        ],
        out_specs=pl.BlockSpec((tile_n, H), lambda i, mw: (i, 0)),
    )

    return pl.pallas_call(
        kernel,
        out_shape=jax.ShapeDtypeStruct((N, H), x.dtype),
        grid_spec=grid_spec,
        compiler_params=pltpu.CompilerParams(
            dimension_semantics=("parallel",),     # N tiles are independent -> megacore/2-TC
            vmem_limit_bytes=32 * 1024 * 1024,
        ),
    )(mixw, x_c, wcat, bcat)


def la_mixed_op_ref(x, weights, op_w, op_b):
    """Pure-JAX reference of LaMixedOp.forward (f32)."""
    out = jnp.zeros_like(x, dtype=jnp.float32)
    for k in range(weights.shape[0]):
        y = x @ op_w[k].T + op_b[k]
        out = out + weights[k] * jax.nn.relu(y)
    return out.astype(x.dtype)


if __name__ == "__main__":
    # Small graph-level shapes: 8 nodes, hidden_size=32, 4 FF primitives (K*H = 128 lanes).
    N, H, K = 8, 32, 4

    key = jax.random.PRNGKey(0)
    kx, kw, kb, ka = jax.random.split(key, 4)

    x = jax.random.normal(kx, (N, H), dtype=jnp.float32)
    op_w = jax.random.normal(kw, (K, H, H), dtype=jnp.float32) * (1.0 / jnp.sqrt(H))
    op_b = jax.random.normal(kb, (K, H), dtype=jnp.float32) * 0.1
    weights = jax.nn.softmax(jax.random.normal(ka, (K,), dtype=jnp.float32))

    ref = la_mixed_op_ref(x, weights, op_w, op_b)

    # 1) f32 compute path: tight check of kernel math.
    wcat32, bcat32 = prepare_la_mixed_params(op_w, op_b, compute_dtype=jnp.float32)
    out_f32 = la_mixed_op(x, weights, wcat32, bcat32, compute_dtype=jnp.float32)
    out_f32 = jax.block_until_ready(out_f32)
    assert out_f32.shape == (N, H)
    assert jnp.allclose(out_f32, ref, atol=1e-4, rtol=1e-4), "f32 path mismatch vs reference"

    # 2) bf16 MXU path (production setting): looser tolerance for input quantization.
    wcat16, bcat16 = prepare_la_mixed_params(op_w, op_b, compute_dtype=jnp.bfloat16)
    out_bf16 = la_mixed_op(x, weights, wcat16, bcat16, compute_dtype=jnp.bfloat16)
    out_bf16 = jax.block_until_ready(out_bf16)
    assert out_bf16.shape == (N, H)
    assert jnp.allclose(out_bf16, ref, atol=5e-2, rtol=5e-2), "bf16 path mismatch vs reference"

    print("KERNEL_OK")
</pallas_src>

<mosaic_0001>
module attributes {stable_mosaic.version = 11 : i64} {
  func.func @_la_mixed_fused_kernel(%arg0: i32, %arg1: memref<4xf32, #tpu.memory_space<smem>>, %arg2: memref<8x32xf32, #tpu.memory_space<vmem>>, %arg3: memref<32x128xf32, #tpu.memory_space<vmem>>, %arg4: memref<1x128xf32, #tpu.memory_space<vmem>>, %arg5: memref<8x32xf32, #tpu.memory_space<vmem>>) attributes {dimension_semantics = [#tpu.dimension_semantics<parallel>], iteration_bounds = array<i64: 1>, scalar_prefetch = 1 : i64, scratch_operands = 0 : i64, tpu.core_type = #tpu.core_type<tc>, window_params = [{transform_indices = @transform_0, window_bounds = array<i64: 8, 32>}, {pipeline_mode = #tpu.pipeline_mode<synchronous>, transform_indices = @transform_1, window_bounds = array<i64: 32, 128>}, {pipeline_mode = #tpu.pipeline_mode<synchronous>, transform_indices = @transform_2, window_bounds = array<i64: 1, 128>}, {transform_indices = @transform_3, window_bounds = array<i64: 8, 32>}]} {
    %c0 = arith.constant 0 : index
    %c0_0 = arith.constant 0 : index
    %0 = vector.load %arg2[%c0, %c0_0] : memref<8x32xf32, #tpu.memory_space<vmem>>, vector<8x32xf32>
    %c0_1 = arith.constant 0 : index
    %c0_2 = arith.constant 0 : index
    %1 = vector.load %arg3[%c0_1, %c0_2] : memref<32x128xf32, #tpu.memory_space<vmem>>, vector<32x128xf32>
    %cst = arith.constant dense<0.000000e+00> : vector<8x128xf32>
    %2 = tpu.matmul %0, %1, %cst {dimension_numbers = #tpu.dot_dimension_numbers<[1], [0], [0], [1], [0, 0, 1, 1], [], []>} : vector<8x32xf32>, vector<32x128xf32>, vector<8x128xf32> -> vector<8x128xf32>
    %c0_3 = arith.constant 0 : index
    %c0_4 = arith.constant 0 : index
    %3 = vector.load %arg4[%c0_3, %c0_4] : memref<1x128xf32, #tpu.memory_space<vmem>>, vector<1x128xf32>
    %4 = vector.broadcast %3 : vector<1x128xf32> to vector<8x128xf32>
    %5 = arith.addf %2, %4 : vector<8x128xf32>
    %cst_5 = arith.constant 0.000000e+00 : f32
    %6 = vector.broadcast %cst_5 : f32 to vector<8x128xf32>
    %7 = arith.maximumf %5, %6 : vector<8x128xf32>
    %c0_6 = arith.constant 0 : index
    %8 = memref.load %arg1[%c0_6] : memref<4xf32, #tpu.memory_space<smem>>
    %9 = vector.extract_strided_slice %7 {offsets = [0, 0], sizes = [8, 32], strides = [1, 1]} : vector<8x128xf32> to vector<8x32xf32>
    %10 = vector.broadcast %8 : f32 to vector<8x32xf32>
    %11 = arith.mulf %10, %9 : vector<8x32xf32>
    %c1 = arith.constant 1 : index
    %12 = memref.load %arg1[%c1] : memref<4xf32, #tpu.memory_space<smem>>
    %13 = vector.extract_strided_slice %7 {offsets = [0, 32], sizes = [8, 32], strides = [1, 1]} : vector<8x128xf32> to vector<8x32xf32>
    %14 = vector.broadcast %12 : f32 to vector<8x32xf32>
    %15 = arith.mulf %14, %13 : vector<8x32xf32>
    %16 = arith.addf %11, %15 : vector<8x32xf32>
    %c2 = arith.constant 2 : index
    %17 = memref.load %arg1[%c2] : memref<4xf32, #tpu.memory_space<smem>>
    %18 = vector.extract_strided_slice %7 {offsets = [0, 64], sizes = [8, 32], strides = [1, 1]} : vector<8x128xf32> to vector<8x32xf32>
    %19 = vector.broadcast %17 : f32 to vector<8x32xf32>
    %20 = arith.mulf %19, %18 : vector<8x32xf32>
    %21 = arith.addf %16, %20 : vector<8x32xf32>
    %c3 = arith.constant 3 : index
    %22 = memref.load %arg1[%c3] : memref<4xf32, #tpu.memory_space<smem>>
    %23 = vector.extract_strided_slice %7 {offsets = [0, 96], sizes = [8, 32], strides = [1, 1]} : vector<8x128xf32> to vector<8x32xf32>
    %24 = vector.broadcast %22 : f32 to vector<8x32xf32>
    %25 = arith.mulf %24, %23 : vector<8x32xf32>
    %26 = arith.addf %21, %25 : vector<8x32xf32>
    %c0_7 = arith.constant 0 : index
    %c0_8 = arith.constant 0 : index
    %27 = vector.load %arg5[%c0_7, %c0_8] : memref<8x32xf32, #tpu.memory_space<vmem>>, vector<8x32xf32>
    tpu.vector_store %arg5[%c0_7, %c0_8], %26 {strides = array<i32>} : memref<8x32xf32, #tpu.memory_space<vmem>>, vector<8x32xf32>,
    return
  }
  func.func @transform_0(%arg0: i32, %arg1: memref<4xf32, #tpu.memory_space<smem>>) -> (i32, i32) {
    %c0_i32 = arith.constant 0 : i32
    %c0_i32_0 = arith.constant 0 : i32
    return %arg0, %c0_i32 : i32, i32
  }
  func.func @transform_1(%arg0: i32, %arg1: memref<4xf32, #tpu.memory_space<smem>>) -> (i32, i32) {
    %c0_i32 = arith.constant 0 : i32
    %c0_i32_0 = arith.constant 0 : i32
    %c0_i32_1 = arith.constant 0 : i32
    return %c0_i32, %c0_i32_0 : i32, i32
  }
  func.func @transform_2(%arg0: i32, %arg1: memref<4xf32, #tpu.memory_space<smem>>) -> (i32, i32) {
    %c0_i32 = arith.constant 0 : i32
    %c0_i32_0 = arith.constant 0 : i32
    %c0_i32_1 = arith.constant 0 : i32
    return %c0_i32, %c0_i32_0 : i32, i32
  }
  func.func @transform_3(%arg0: i32, %arg1: memref<4xf32, #tpu.memory_space<smem>>) -> (i32, i32) {
    %c0_i32 = arith.constant 0 : i32
    %c0_i32_0 = arith.constant 0 : i32
    return %arg0, %c0_i32 : i32, i32
  }
}

</mosaic_0001>

<bundles_post_ra>
// kernel: tpu_custom_call.1
= control target key start
LH: loop header
LB: loop body
LE: loop exit
PB: predicated region body
PF: predicated region fallthrough
CT: control target
= control target key end

     0   :  { %s285_s15 = smov [#allocation3]   ;;  %s338_s0 = inlined_call_operand.hbm [shape: f32[4], index: 0, kind: input, shape index: {}]   ;;  %s339_s1 = inlined_call_operand.hbm [shape: f32[8,32], index: 1, kind: input, shape index: {}]   ;;  %s340_s2 = inlined_call_operand.hbm [shape: f32[32,128], index: 2, kind: input, shape index: {}]   ;;  %s341_s3 = inlined_call_operand.vmem [shape: f32[1,128], index: 3, kind: input, shape index: {}]   ;;  %s342_s4 = inlined_call_operand.hbm [shape: f32[8,32], index: 4, kind: output, shape index: {}]  }
   0x1   :  { %10 = dma.hbm_to_smem %s338_s0, 16, %s285_s15, [#allocation2] }
   0x2   :  { %277 = dma.done.wait [#allocation2], 16 }
   0x3   :  { %278 = vsyncadd [#allocation2], 4294967280 }
   0x4   :  { %12 = sfence }
   0x5   :  { %13 = vsyncpa [#allocation5], 0 }
   0x6   :  { %14 = vsyncpa [#allocation8], 0 }
   0x7   :  { %15 = vsyncpa [#allocation6], 0  ;;  %s286_s18 = smov [#allocation4]   ;;  %s287_s20 = smov [#allocation7]  }
   0x8   :  { %s22_s19 = sshll.u32 %s286_s18, 4  ;;  %s31_s21 = sshll.u32 %s287_s20, 4  ;;  %s23_s19 = int_to_ptr.vmem [resolvable:$true] %s22_s19  ;;  %s32_s21 = int_to_ptr.vmem [resolvable:$true] %s31_s21 }
   0x9   :  { %s225_s22 = scalar_lea.vmem %s23_s19, 128  ;;  %p230_p1 = scmp.lt.s32.totalorder %s23_s19, %s23_s19 }
   0xa   :  { %p226_p0 = scmp.ne.s32.totalorder %s23_s19, %s225_s22  ;;  %p231_p2 = scmp.lt.s32.totalorder %s225_s22, %s225_s22 }
   0xc   :  { %p232_p3 = por %p231_p2, %p230_p1 }
   0xe   :  { %p233_p4 = pnand %p232_p3, %p226_p0 }
  0x10   :  { %236 = shalt.err (!%p233_p4)
}
  0x11   :  { %25 = dma.hbm_to_vmem [thread:$0]  %s339_s1, 128, %s23_s19, [#allocation5]  }
  0x12   :  { %s245_s24 = scalar_lea.vmem %s32_s21, 512  ;;  %p250_p6 = scmp.lt.s32.totalorder %s32_s21, %s32_s21 }
  0x13   :  { %p246_p5 = scmp.ne.s32.totalorder %s32_s21, %s245_s24  ;;  %p251_p7 = scmp.lt.s32.totalorder %s245_s24, %s245_s24 }
  0x15   :  { %p252_p8 = por %p251_p7, %p250_p6 }
  0x17   :  { %p253_p9 = pnand %p252_p8, %p246_p5 }
  0x19   :  { %256 = shalt.err (!%p253_p9)
}
  0x1a   :  { %s288_s25 = smov 128   ;;  %s289_s26 = smov 8  }
  0x1b   :  { %37 = dma.hbm_to_vmem [thread:$0]  %s340_s2, 512, %s32_s21, [#allocation8], %s288_s25, %s288_s25, %s289_s26  }
  0x1c   :  { %279 = dma.done.wait [#allocation5], 128  }
  0x1d   :  { %280 = vsyncadd [#allocation5], 4294967168 }
  0x1e   :  { %281 = dma.done.wait [#allocation8], 512  }
  0x1f   :  { %282 = vsyncadd [#allocation8], 4294966784  ;;  %v290_v0 = vmov 0.0   ;;  %vm291_vm0 = vmmov 0   ;;  %v50_v1 = vld [vmem:[#allocation7 + $0x18] sm:$0xff]  ;;  %v49_v2 = vld [vmem:[#allocation7 + $0x10] sm:$0xff] }
  0x20   :  { %187 = vmatprep.subr.mxu0 %v290_v0  ;;  %195 = vmatprep.mubr.msk.f32.mxu0 %vm291_vm0, %v290_v0  ;;  %v48_v3 = vld [vmem:[#allocation7 + $0x8] sm:$0xff]  ;;  %v47_v4 = vld [vmem:[#allocation7] sm:$0xff]  ;;  %v46_v5 = vld [vmem:[#allocation4] sm:$0xff]  ;;  %vm58_vm1 = vcmask 261120   ;;  %s181_s1 = sld [smem:[#allocation3 + $0x3]]  ;;  %s292_s6 = smov 32  }
  0x21   :  { %188 = vmatpush3.msra.mxu0 %v50_v1  ;;  %s179_s2 = sld [smem:[#allocation3 + $0x1]]  ;;  %v177_v6 = vld [vmem:[%s341_s3] ss:$0 sm:$0xff]  ;;  %s293_s7 = smov 96  }
  0x22   :  { %189 = vmatprep.subr.mxu0 %v290_v0  ;;  %s180_s5 = sld [smem:[#allocation3 + $0x2]]  ;;  %s294_s8 = smov 64  }
  0x23   :  { %190 = vmatpush3.msra.mxu0 %v49_v2  ;;  %s133_s9 = sld [smem:[#allocation3]]  ;;  %s295_s3 = smov [#allocation9]  }
  0x24   :  { %191 = vmatprep.subr.mxu0 %v290_v0  ;;  %s167_s10 = sshll.u32 %s295_s3, 4  ;;  %s168_s10 = int_to_ptr.vmem [resolvable:$true] %s167_s10 }
  0x25   :  { %192 = vmatpush3.msra.mxu0 %v48_v3  ;;  %s257_s11 = scalar_lea.vmem %s168_s10, 128  ;;  %p262_p11 = scmp.lt.s32.totalorder %s168_s10, %s168_s10 }
  0x26   :  { %193 = vmatprep.subr.mxu0 %v290_v0  ;;  %v153_v10 = vstv %s181_s1  ;;  %p258_p10 = scmp.ne.s32.totalorder %s168_s10, %s257_s11  ;;  %p263_p12 = scmp.lt.s32.totalorder %s257_s11, %s257_s11 }
  0x27   :  { %194 = vmatpush3.msra.mxu0 %v47_v4  ;;  %v137_v11 = vstv %s179_s2 }
  0x28   :  { %196 = vmatmul.mubr.msk.f32.vlgmr.msra.gmra.mxu0 %vm58_vm1, %v46_v5  ;;  %v145_v15 = vstv %s180_s5  ;;  %p264_p13 = por %p263_p12, %p262_p11 }
  0x29   :  { %v134_v17 = vstv %s133_s9 }
  0x2a   :  { %p265_p0 = pnand %p264_p13, %p258_p10 }
  0xe8   :  { %v128_v7 = vpop.f32.mrf.mxu0 }
  0xe9   :  { %v129_v8 = vadd.f32 %v177_v6, %v128_v7 }
  0xea   :  { %v197_v9 = vpop.f32.mrf.mxu0 }
  0xeb   :  { %v132_v12 = vmax.f32 %v129_v8, 0.0 }
  0xed   :  { %v154_v13 = vmul.f32 %v153_v10, %v132_v12  ;;  %v138_v14 = vmul.f32 %v137_v11, %v132_v12  ;;  %v146_v16 = vmul.f32 %v145_v15, %v132_v12  ;;  %v135_v19 = vmul.f32 %v134_v17, %v132_v12 }
  0xef   :  { %156 = vrot.lane.b32.xlu1 %v154_v13, %s292_s6  ;;  %140 = vrot.lane.b32.xlu0 %v138_v14, %s293_s7 }
  0xf3   :  { %148 = vrot.lane.b32.xlu0 %v146_v16, %s294_s8 }
 0x161   :  { %v141_v18 = vpop.permute.xlu0 %140  ;;  %v157_v23 = vpop.permute.xlu1 %156 }
 0x162   :  { %v143_v20 = vadd.f32 %v141_v18, %v135_v19 }
 0x165   :  { %v149_v21 = vpop.permute.xlu0 %148 }
 0x166   :  { %v151_v22 = vadd.f32 %v149_v21, %v143_v20 }
 0x168   :  { %v159_v24 = vadd.f32 %v157_v23, %v151_v22 }
 0x16a   :  { %160 = vst.msk [vmem:[#allocation9] sm:$0xff] %vm58_vm1, %v159_v24 }
 0x16b   :  { %268 = shalt.err (!%p265_p0)
}
 0x16c   :  { %170 = dma.vmem_to_hbm [thread:$0]  %s168_s10, 128, %s342_s4, [#allocation6]  }
 0x16d   :  { %283 = dma.done.wait [#allocation6], 128  }
 0x16e   :  { %284 = vsyncadd [#allocation6], 4294967168 }
 0x16f   :  { %174 = vsyncpa [#allocation5], 1 }
 0x170   :  { %175 = vsyncpa [#allocation8], 1 }
 0x171   :  { %176 = vsyncpa [#allocation6], 1 }

</bundles_post_ra>
